<compile_context>
chip_gen: v5e
topology: v5e:2x2
jax: 0.10.0
libtpu: 0.0.40
codegen_flags: <defaults>
</compile_context>

<pallas_src>
import functools

import jax
import jax.numpy as jnp
from jax.experimental import pallas as pl
from jax.experimental.pallas import tpu as pltpu


# ----------------------------- Pallas kernel -------------------------------

def _fused_mlp_kernel(*refs, num_layers, compute_dtype):
    """Fused MLP on one row tile (batch on the lane axis).

    refs = (x_ref, w0, b0, w1, b1, ..., o_ref)
      x_ref : (dim_in, TN)       input tile, compute_dtype
      w_l   : (d_out_l, d_in_l)  full weight, PyTorch layout, compute_dtype
      b_l   : (d_out_l, 1)       bias column, f32
      o_ref : (dim_out, TN)      output tile, f32
    """
    x_ref = refs[0]
    o_ref = refs[-1]
    wb = refs[1:-1]

    h = x_ref[...]
    y = h
    for l in range(num_layers):
        w = wb[2 * l][...]
        b = wb[2 * l + 1][...]
        # MXU matmul with f32 accumulation; bias + activation epilogue in f32.
        y = jnp.dot(w, h, preferred_element_type=jnp.float32) + b
        if l != num_layers - 1:
            # PyTorch Softplus(beta=1, threshold=20): stable single-branch form
            # plus the exact >20 linear passthrough.
            sp = jnp.maximum(y, 0.0) + jnp.log1p(jnp.exp(-jnp.abs(y)))
            y = jnp.where(y > 20.0, y, sp)
            h = y.astype(compute_dtype)
    o_ref[...] = y.astype(o_ref.dtype)


# ------------------------------ MLP forward --------------------------------

def mlp_forward(x, params, *, tile_n=512, compute_dtype=jnp.float32):
    """Fused MLP forward.

    x:      (N, dim_in) float32
    params: list of (W_l (d_out, d_in), b_l (d_out,)) in PyTorch layout
    """
    n, dim_in = x.shape
    num_layers = len(params)
    dim_out = params[-1][0].shape[0]

    if tile_n % 128 != 0:
        raise ValueError("tile_n must be a multiple of 128 (lane width)")
    # Shrink the tile for small batches but keep it lane-dense.
    tile_n = min(tile_n, pl.cdiv(n, 128) * 128)
    n_pad = pl.cdiv(n, tile_n) * tile_n

    # Lane-dense layout: batch on the lane axis.
    xt = jnp.transpose(x).astype(compute_dtype)            # (dim_in, N)
    if n_pad != n:
        xt = jnp.pad(xt, ((0, 0), (0, n_pad - n)))

    inputs = [xt]
    in_specs = [pl.BlockSpec((dim_in, tile_n), lambda i: (0, i))]
    for w, b in params:
        d_o, d_i = w.shape
        inputs.append(w.astype(compute_dtype))
        inputs.append(b.astype(jnp.float32).reshape(d_o, 1))
        # Full-array blocks + constant index_map -> VMEM-resident for the grid.
        in_specs.append(pl.BlockSpec((d_o, d_i), lambda i: (0, 0)))
        in_specs.append(pl.BlockSpec((d_o, 1), lambda i: (0, 0)))

    out = pl.pallas_call(
        functools.partial(_fused_mlp_kernel, num_layers=num_layers,
                          compute_dtype=compute_dtype),
        out_shape=jax.ShapeDtypeStruct((dim_out, n_pad), jnp.float32),
        grid_spec=pltpu.PrefetchScalarGridSpec(
            num_scalar_prefetch=0,
            grid=(n_pad // tile_n,),
            in_specs=in_specs,
            out_specs=pl.BlockSpec((dim_out, tile_n), lambda i: (0, i)),
        ),
        compiler_params=pltpu.CompilerParams(
            dimension_semantics=("parallel",)),
    )(*inputs)

    return jnp.transpose(out[:, :n])                        # (N, dim_out)


# --------------------------- Parameter init --------------------------------

def init_linear_params(key, dim_in, dim_out):
    """nn.Linear-style init; PyTorch layout: W (dim_out, dim_in), b (dim_out,)."""
    kw, kb = jax.random.split(key)
    bound = 1.0 / jnp.sqrt(jnp.float32(dim_in))
    w = jax.random.uniform(kw, (dim_out, dim_in), jnp.float32, -bound, bound)
    b = jax.random.uniform(kb, (dim_out,), jnp.float32, -bound, bound)
    return w, b


def init_mlp_params(key, dim_in, dim_out, dim_hidden, num_layers):
    keys = jax.random.split(key, num_layers)
    if num_layers == 1:
        return [init_linear_params(keys[0], dim_in, dim_out)]
    params = []
    for l in range(num_layers):
        if l == 0:
            params.append(init_linear_params(keys[l], dim_in, dim_hidden))
        elif l != num_layers - 1:
            params.append(init_linear_params(keys[l], dim_hidden, dim_hidden))
        else:
            params.append(init_linear_params(keys[l], dim_hidden, dim_out))
    return params


def mlp_reference(x, params):
    """Pure-JAX reference (same math as the PyTorch module)."""
    num_layers = len(params)
    h = x
    for l, (w, b) in enumerate(params):
        h = h @ w.T + b
        if l != num_layers - 1:
            h = jnp.where(h > 20.0, h, jnp.log1p(jnp.exp(jnp.minimum(h, 20.0))))
    return h


# ---------------------------------- main -----------------------------------

if __name__ == "__main__":
    # MLP(dim_in=8, dim_out=4, dim_hidden=32, num_layers=3,
    #     activation='softplus', norm=False)
    dim_in, dim_out, dim_hidden, num_layers = 8, 4, 32, 3

    key = jax.random.PRNGKey(0)
    k1, k2, k3 = jax.random.split(key, 3)
    params = init_mlp_params(k1, dim_in, dim_out, dim_hidden, num_layers)

    # Small batch (tile auto-shrinks to 128 lanes).
    x_small = jax.random.normal(k2, (16, dim_in), jnp.float32)
    out_small = jax.block_until_ready(mlp_forward(x_small, params))
    ref_small = mlp_reference(x_small, params)
    assert out_small.shape == (16, dim_out)
    assert jnp.allclose(out_small, ref_small, atol=1e-4, rtol=1e-4)

    # Batch not a multiple of the tile -> exercises padding + multi-step grid.
    x_big = jax.random.normal(k3, (300, dim_in), jnp.float32)
    out_big = jax.block_until_ready(mlp_forward(x_big, params, tile_n=128))
    ref_big = mlp_reference(x_big, params)
    assert out_big.shape == (300, dim_out)
    assert jnp.allclose(out_big, ref_big, atol=1e-4, rtol=1e-4)

    # bf16 transfer/compute path (v6e/v7x); f32 epilogue -> loose smoke check.
    out_bf16 = jax.block_until_ready(
        mlp_forward(x_big, params, tile_n=128, compute_dtype=jnp.bfloat16))
    assert out_bf16.shape == (300, dim_out)
    assert jnp.allclose(out_bf16, ref_big, atol=1e-1, rtol=1e-1)

    # num_layers == 1 path (single Linear, no activation).
    params1 = init_mlp_params(k1, dim_in, dim_out, dim_hidden, 1)
    out1 = jax.block_until_ready(mlp_forward(x_small, params1))
    ref1 = x_small @ params1[0][0].T + params1[0][1]
    assert jnp.allclose(out1, ref1, atol=1e-4, rtol=1e-4)

    print("KERNEL_OK")
</pallas_src>

<mosaic_0001>
module attributes {stable_mosaic.version = 11 : i64} {
  func.func @_fused_mlp_kernel(%arg0: i32, %arg1: memref<8x128xf32, #tpu.memory_space<vmem>>, %arg2: memref<32x8xf32, #tpu.memory_space<vmem>>, %arg3: memref<32x1xf32, #tpu.memory_space<vmem>>, %arg4: memref<32x32xf32, #tpu.memory_space<vmem>>, %arg5: memref<32x1xf32, #tpu.memory_space<vmem>>, %arg6: memref<4x32xf32, #tpu.memory_space<vmem>>, %arg7: memref<4x1xf32, #tpu.memory_space<vmem>>, %arg8: memref<4x128xf32, #tpu.memory_space<vmem>>) attributes {dimension_semantics = [#tpu.dimension_semantics<parallel>], iteration_bounds = array<i64: 1>, scalar_prefetch = 0 : i64, scratch_operands = 0 : i64, tpu.core_type = #tpu.core_type<tc>, window_params = [{transform_indices = @transform_0, window_bounds = array<i64: 8, 128>}, {pipeline_mode = #tpu.pipeline_mode<synchronous>, transform_indices = @transform_1, window_bounds = array<i64: 32, 8>}, {pipeline_mode = #tpu.pipeline_mode<synchronous>, transform_indices = @transform_2, window_bounds = array<i64: 32, 1>}, {pipeline_mode = #tpu.pipeline_mode<synchronous>, transform_indices = @transform_3, window_bounds = array<i64: 32, 32>}, {pipeline_mode = #tpu.pipeline_mode<synchronous>, transform_indices = @transform_4, window_bounds = array<i64: 32, 1>}, {pipeline_mode = #tpu.pipeline_mode<synchronous>, transform_indices = @transform_5, window_bounds = array<i64: 4, 32>}, {pipeline_mode = #tpu.pipeline_mode<synchronous>, transform_indices = @transform_6, window_bounds = array<i64: 4, 1>}, {transform_indices = @transform_7, window_bounds = array<i64: 4, 128>}]} {
    %c0 = arith.constant 0 : index
    %c0_0 = arith.constant 0 : index
    %0 = vector.load %arg1[%c0, %c0_0] : memref<8x128xf32, #tpu.memory_space<vmem>>, vector<8x128xf32>
    %c0_1 = arith.constant 0 : index
    %c0_2 = arith.constant 0 : index
    %1 = vector.load %arg2[%c0_1, %c0_2] : memref<32x8xf32, #tpu.memory_space<vmem>>, vector<32x8xf32>
    %c0_3 = arith.constant 0 : index
    %c0_4 = arith.constant 0 : index
    %2 = vector.load %arg3[%c0_3, %c0_4] : memref<32x1xf32, #tpu.memory_space<vmem>>, vector<32x1xf32>
    %cst = arith.constant dense<0.000000e+00> : vector<32x128xf32>
    %3 = tpu.matmul %1, %0, %cst {dimension_numbers = #tpu.dot_dimension_numbers<[1], [0], [0], [1], [0, 0, 1, 1], [], []>} : vector<32x8xf32>, vector<8x128xf32>, vector<32x128xf32> -> vector<32x128xf32>
    %4 = vector.broadcast %2 : vector<32x1xf32> to vector<32x128xf32>
    %5 = arith.addf %3, %4 : vector<32x128xf32>
    %cst_5 = arith.constant 0.000000e+00 : f32
    %6 = vector.broadcast %cst_5 : f32 to vector<32x128xf32>
    %7 = arith.maximumf %5, %6 : vector<32x128xf32>
    %8 = math.absf %5 : vector<32x128xf32>
    %cst_6 = arith.constant 0.000000e+00 : f32
    %9 = vector.broadcast %cst_6 : f32 to vector<32x128xf32>
    %10 = arith.subf %9, %8 : vector<32x128xf32>
    %11 = math.exp %10 : vector<32x128xf32>
    %12 = math.log1p %11 : vector<32x128xf32>
    %13 = arith.addf %7, %12 : vector<32x128xf32>
    %cst_7 = arith.constant 2.000000e+01 : f32
    %14 = vector.broadcast %cst_7 : f32 to vector<32x128xf32>
    %15 = arith.cmpf ogt, %5, %14 : vector<32x128xf32>
    %16 = arith.select %15, %5, %13 : vector<32x128xi1>, vector<32x128xf32>
    %c0_8 = arith.constant 0 : index
    %c0_9 = arith.constant 0 : index
    %17 = vector.load %arg4[%c0_8, %c0_9] : memref<32x32xf32, #tpu.memory_space<vmem>>, vector<32x32xf32>
    %c0_10 = arith.constant 0 : index
    %c0_11 = arith.constant 0 : index
    %18 = vector.load %arg5[%c0_10, %c0_11] : memref<32x1xf32, #tpu.memory_space<vmem>>, vector<32x1xf32>
    %cst_12 = arith.constant dense<0.000000e+00> : vector<32x128xf32>
    %19 = tpu.matmul %17, %16, %cst_12 {dimension_numbers = #tpu.dot_dimension_numbers<[1], [0], [0], [1], [0, 0, 1, 1], [], []>} : vector<32x32xf32>, vector<32x128xf32>, vector<32x128xf32> -> vector<32x128xf32>
    %20 = vector.broadcast %18 : vector<32x1xf32> to vector<32x128xf32>
    %21 = arith.addf %19, %20 : vector<32x128xf32>
    %cst_13 = arith.constant 0.000000e+00 : f32
    %22 = vector.broadcast %cst_13 : f32 to vector<32x128xf32>
    %23 = arith.maximumf %21, %22 : vector<32x128xf32>
    %24 = math.absf %21 : vector<32x128xf32>
    %cst_14 = arith.constant 0.000000e+00 : f32
    %25 = vector.broadcast %cst_14 : f32 to vector<32x128xf32>
    %26 = arith.subf %25, %24 : vector<32x128xf32>
    %27 = math.exp %26 : vector<32x128xf32>
    %28 = math.log1p %27 : vector<32x128xf32>
    %29 = arith.addf %23, %28 : vector<32x128xf32>
    %cst_15 = arith.constant 2.000000e+01 : f32
    %30 = vector.broadcast %cst_15 : f32 to vector<32x128xf32>
    %31 = arith.cmpf ogt, %21, %30 : vector<32x128xf32>
    %32 = arith.select %31, %21, %29 : vector<32x128xi1>, vector<32x128xf32>
    %c0_16 = arith.constant 0 : index
    %c0_17 = arith.constant 0 : index
    %33 = vector.load %arg6[%c0_16, %c0_17] : memref<4x32xf32, #tpu.memory_space<vmem>>, vector<4x32xf32>
    %c0_18 = arith.constant 0 : index
    %c0_19 = arith.constant 0 : index
    %34 = vector.load %arg7[%c0_18, %c0_19] : memref<4x1xf32, #tpu.memory_space<vmem>>, vector<4x1xf32>
    %cst_20 = arith.constant dense<0.000000e+00> : vector<4x128xf32>
    %35 = tpu.matmul %33, %32, %cst_20 {dimension_numbers = #tpu.dot_dimension_numbers<[1], [0], [0], [1], [0, 0, 1, 1], [], []>} : vector<4x32xf32>, vector<32x128xf32>, vector<4x128xf32> -> vector<4x128xf32>
    %36 = vector.broadcast %34 : vector<4x1xf32> to vector<4x128xf32>
    %37 = arith.addf %35, %36 : vector<4x128xf32>
    %c0_21 = arith.constant 0 : index
    %c0_22 = arith.constant 0 : index
    %38 = vector.load %arg8[%c0_21, %c0_22] : memref<4x128xf32, #tpu.memory_space<vmem>>, vector<4x128xf32>
    tpu.vector_store %arg8[%c0_21, %c0_22], %37 {strides = array<i32>} : memref<4x128xf32, #tpu.memory_space<vmem>>, vector<4x128xf32>,
    return
  }
  func.func @transform_0(%arg0: i32) -> (i32, i32) {
    %c0_i32 = arith.constant 0 : i32
    %c0_i32_0 = arith.constant 0 : i32
    return %c0_i32, %arg0 : i32, i32
  }
  func.func @transform_1(%arg0: i32) -> (i32, i32) {
    %c0_i32 = arith.constant 0 : i32
    %c0_i32_0 = arith.constant 0 : i32
    %c0_i32_1 = arith.constant 0 : i32
    return %c0_i32, %c0_i32_0 : i32, i32
  }
  func.func @transform_2(%arg0: i32) -> (i32, i32) {
    %c0_i32 = arith.constant 0 : i32
    %c0_i32_0 = arith.constant 0 : i32
    %c0_i32_1 = arith.constant 0 : i32
    return %c0_i32, %c0_i32_0 : i32, i32
  }
  func.func @transform_3(%arg0: i32) -> (i32, i32) {
    %c0_i32 = arith.constant 0 : i32
    %c0_i32_0 = arith.constant 0 : i32
    %c0_i32_1 = arith.constant 0 : i32
    return %c0_i32, %c0_i32_0 : i32, i32
  }
  func.func @transform_4(%arg0: i32) -> (i32, i32) {
    %c0_i32 = arith.constant 0 : i32
    %c0_i32_0 = arith.constant 0 : i32
    %c0_i32_1 = arith.constant 0 : i32
    return %c0_i32, %c0_i32_0 : i32, i32
  }
  func.func @transform_5(%arg0: i32) -> (i32, i32) {
    %c0_i32 = arith.constant 0 : i32
    %c0_i32_0 = arith.constant 0 : i32
    %c0_i32_1 = arith.constant 0 : i32
    return %c0_i32, %c0_i32_0 : i32, i32
  }
  func.func @transform_6(%arg0: i32) -> (i32, i32) {
    %c0_i32 = arith.constant 0 : i32
    %c0_i32_0 = arith.constant 0 : i32
    %c0_i32_1 = arith.constant 0 : i32
    return %c0_i32, %c0_i32_0 : i32, i32
  }
  func.func @transform_7(%arg0: i32) -> (i32, i32) {
    %c0_i32 = arith.constant 0 : i32
    %c0_i32_0 = arith.constant 0 : i32
    return %c0_i32, %arg0 : i32, i32
  }
}

</mosaic_0001>

<bundles_post_ra>
// kernel: tpu_custom_call.1
= control target key start
LH: loop header
LB: loop body
LE: loop exit
PB: predicated region body
PF: predicated region fallthrough
CT: control target
= control target key end

     0   :  { %vm56_vm0 = vcmask 64512   ;;  %v428_v5 = vmov 0   ;;  %s575_s0 = inlined_call_operand.vmem [shape: f32[8,128], index: 0, kind: input, shape index: {}]   ;;  %s576_s1 = inlined_call_operand.vmem [shape: f32[32,8], index: 1, kind: input, shape index: {}]   ;;  %s577_s2 = inlined_call_operand.vmem [shape: f32[32,1], index: 2, kind: input, shape index: {}]   ;;  %s578_s3 = inlined_call_operand.vmem [shape: f32[32,32], index: 3, kind: input, shape index: {}]   ;;  %s579_s4 = inlined_call_operand.vmem [shape: f32[32,1], index: 4, kind: input, shape index: {}]   ;;  %s580_s5 = inlined_call_operand.vmem [shape: f32[4,32], index: 5, kind: input, shape index: {}]   ;;  %s581_s6 = inlined_call_operand.vmem [shape: f32[4,1], index: 6, kind: input, shape index: {}]   ;;  %s582_s7 = inlined_call_operand.hbm [shape: f32[4,128], index: 7, kind: output, shape index: {}]  }
   0x1   :  { %v27_v0 = vld [vmem:[%s575_s0] sm:$0xff]  ;;  %v31_v2 = vld [vmem:[%s576_s1 + $0x18] sm:$0xff]  ;;  %v33_v4 = vld [vmem:[%s577_s2 + $0x8] sm:$0xff]  ;;  %368 = vset.pattern.permute.xlu1 %v428_v5  ;;  %367 = vset.pattern.permute.xlu0 %v428_v5 }
   0x2   :  { %v28_v1 = vld [vmem:[%s576_s1] sm:$0xff]  ;;  %84 = vmatpush.msra.mxu0 %v27_v0  ;;  %360 = vmatpush.msra.mxu2 %v27_v0  ;;  %v35_v3 = vld [vmem:[%s577_s2 + $0x18] sm:$0xff] }
   0x3   :  { %351 = vmatmul.msk.f32.vlgmr.msra.gmra.mxu0 %vm56_vm0, %v28_v1  ;;  %354 = vmatmul.msk.f32.vlgmr.msra.gmra.mxu2 %vm56_vm0, %v31_v2 }
   0x4   :  { %12 = vsyncpa [#allocation3], 0  ;;  %53 = vperm.xlu0 %367, %v35_v3   ;;  %43 = vperm.xlu1 %368, %v33_v4   ;;  %v29_v6 = vld [vmem:[%s576_s1 + $0x8] sm:$0xff]  ;;  %v34_v7 = vld [vmem:[%s577_s2 + $0x10] sm:$0xff]  ;;  %vm194_vm9 = vcmask 261120   ;;  %s429_s10 = smov [#allocation2]  }
   0x5   :  { %369 = vset.pattern.permute.xlu2 %v428_v5  ;;  %v32_v8 = vld [vmem:[%s577_s2] sm:$0xff]  ;;  %v30_v9 = vld [vmem:[%s576_s1 + $0x10] sm:$0xff]  ;;  %v171_v10 = vld [vmem:[%s579_s4 + $0x8] sm:$0xff]  ;;  %s340_s0 = sshll.u32 %s429_s10, 4  ;;  %s342_s13 = sshll.u32 %s582_s7, 4  ;;  %s341_s0 = int_to_ptr.vmem [resolvable:$true] %s340_s0  ;;  %s343_s13 = int_to_ptr.hbm [resolvable:$true] %s342_s13 }
   0x6   :  { %v170_v11 = vld [vmem:[%s579_s4] sm:$0xff]  ;;  %v173_v45 = vld [vmem:[%s579_s4 + $0x18] sm:$0xff]  ;;  %v172_v59 = vld [vmem:[%s579_s4 + $0x10] sm:$0xff] }
   0x7   :  { %191 = vperm.xlu2 %369, %v173_v45  }
   0xb   :  { %352 = vmatmul.msk.f32.gmra.mxu0 %vm56_vm0, %v29_v6 }
   0xc   :  { %48 = vperm.xlu0 %367, %v34_v7   ;;  %38 = vperm.xlu1 %368, %v32_v8  }
   0xf   :  { %186 = vperm.xlu2 %369, %v172_v59  }
  0x13   :  { %353 = vmatmul.msk.f32.gmra.mxu0 %vm56_vm0, %v30_v9 }
  0x14   :  { %181 = vperm.xlu0 %367, %v171_v10   ;;  %176 = vperm.xlu1 %368, %v170_v11  }
  0x76   :  { %v44_v12 = vpop.permute.xlu1 %43  ;;  %v54_v17 = vpop.permute.xlu0 %53 }
  0x7e   :  { %v39_v13 = vpop.permute.xlu1 %38  ;;  %v49_v30 = vpop.permute.xlu0 %48 }
  0x80   :  { %v86_v14 = vpop.f32.mrf.mxu0 }
  0x81   :  { %v507_v15 = vadd.f32 %v86_v14, %v39_v13 }
  0x83   :  { %v102_v16 = vand.u32 2147483647, %v507_v15  ;;  %vm158_vm8 = vcmp.gt.f32.partialorder %v507_v15, 20.0 }
  0x85   :  { %v106_v20 = vsub.f32 0.0, %v102_v16  ;;  %v305_v16 = vld [vmem:[%s581_s6] sm:$0xf] }
  0x86   :  { %v95_v18 = vpop.f32.mrf.mxu2  ;;  %308 = vperm.xlu2 %369, %v305_v16  }
  0x87   :  { %v96_v19 = vadd.f32 %v95_v18, %v54_v17  ;;  %v110_v26 = vmul.f32 1.442695, %v106_v20 }
  0x88   :  { %v89_v21 = vpop.f32.mrf.mxu0 }
  0x89   :  { %v105_v22 = vand.u32 2147483647, %v96_v19  ;;  %v510_v23 = vadd.f32 %v89_v21, %v44_v12  ;;  %v101_v51 = vmax.f32 %v96_v19, 0.0  ;;  %vm161_vm2 = vcmp.gt.f32.partialorder %v96_v19, 20.0 }
  0x8b   :  { %v109_v24 = vsub.f32 0.0, %v105_v22  ;;  %v103_v25 = vand.u32 2147483647, %v510_v23  ;;  %v99_v12 = vmax.f32 %v510_v23, 0.0  ;;  %vm159_vm7 = vcmp.gt.f32.partialorder %v510_v23, 20.0 }
  0x8d   :  { %v116_v27 = vmul.f32 1.442695, %v109_v24  ;;  %v107_v28 = vsub.f32 0.0, %v103_v25  ;;  %v166_v24 = vld [vmem:[%s578_s3] sm:$0xff]  ;;  %v168_v25 = vld [vmem:[%s578_s3 + $0x10] sm:$0xff] }
  0x8f   :  { %370 = vpow2.f32 %v116_v27  ;;  %v112_v29 = vmul.f32 1.442695, %v107_v28  ;;  %v169_v27 = vld [vmem:[%s578_s3 + $0x18] sm:$0xff]  ;;  %v192_v28 = vpop.permute.xlu2 %191 }
  0x90   :  { %372 = vpow2.f32 %v110_v26  ;;  %v92_v31 = vpop.f32.mrf.mxu0 }
  0x91   :  { %374 = vpow2.f32 %v112_v29  ;;  %v513_v32 = vadd.f32 %v92_v31, %v49_v30 }
  0x93   :  { %v104_v33 = vand.u32 2147483647, %v513_v32  ;;  %v100_v11 = vmax.f32 %v513_v32, 0.0  ;;  %vm160_vm6 = vcmp.gt.f32.partialorder %v513_v32, 20.0 }
  0x95   :  { %v371_v34 = vpop.eup %370  ;;  %v108_v35 = vsub.f32 0.0, %v104_v33 }
  0x96   :  { %v373_v36 = vpop.eup %372  ;;  %v145_v37 = vadd.f32 1.0, %v371_v34  ;;  %v148_v40 = vmul.f32 -0.5, %v371_v34  ;;  %v151_v44 = vand.u32 2147483647, %v371_v34 }
  0x97   :  { %v375_v38 = vpop.eup %374  ;;  %v114_v39 = vmul.f32 1.442695, %v108_v35  ;;  %v118_v42 = vadd.f32 1.0, %v373_v36  ;;  %v121_v55 = vmul.f32 -0.5, %v373_v36  ;;  %v124_v3 = vand.u32 2147483647, %v373_v36  ;;  %v182_v35 = vpop.permute.xlu0 %181 }
  0x98   :  { %376 = vlog2.f32 %v145_v37  ;;  %v127_v41 = vadd.f32 1.0, %v375_v38  ;;  %v149_v43 = vadd.f32 1.0, %v148_v40  ;;  %v130_v50 = vmul.f32 -0.5, %v375_v38 }
  0x99   :  { %378 = vpow2.f32 %v114_v39  ;;  %vm152_vm1 = vcmp.lt.f32.partialorder %v151_v44, 0.0004427343  ;;  %v133_v62 = vand.u32 2147483647, %v375_v38  ;;  %v122_v1 = vadd.f32 1.0, %v121_v55 }
  0x9a   :  { %380 = vlog2.f32 %v127_v41  ;;  %v150_v49 = vmul.f32 %v371_v34, %v149_v43  ;;  %v131_v58 = vadd.f32 1.0, %v130_v50  ;;  %vm125_vm5 = vcmp.lt.f32.partialorder %v124_v3, 0.0004427343 }
  0x9b   :  { %382 = vlog2.f32 %v118_v42  ;;  %vm134_vm3 = vcmp.lt.f32.partialorder %v133_v62, 0.0004427343  ;;  %v123_v10 = vmul.f32 %v373_v36, %v122_v1 }
  0x9c   :  { %v132_v4 = vmul.f32 %v375_v38, %v131_v58 }
  0x9e   :  { %v377_v46 = vpop.eup %376 }
  0x9f   :  { %v379_v47 = vpop.eup %378  ;;  %v147_v48 = vmul.f32 0.6931472, %v377_v46 }
  0xa0   :  { %v136_v52 = vadd.f32 1.0, %v379_v47  ;;  %v139_v54 = vmul.f32 -0.5, %v379_v47  ;;  %v381_v56 = vpop.eup %380  ;;  %v142_v2 = vand.u32 2147483647, %v379_v47 }
  0xa1   :  { %v153_v53 = vsel %vm152_vm1, %v150_v49, %v147_v48  ;;  %v383_v60 = vpop.eup %382  ;;  %v129_v0 = vmul.f32 0.6931472, %v381_v56 }
  0xa2   :  { %v157_v57 = vadd.f32 %v153_v53, %v101_v51  ;;  %384 = vlog2.f32 %v136_v52  ;;  %v140_v63 = vadd.f32 1.0, %v139_v54  ;;  %v120_v5 = vmul.f32 0.6931472, %v383_v60 }
  0xa3   :  { %v135_v9 = vsel %vm134_vm3, %v132_v4, %v129_v0  ;;  %vm143_vm4 = vcmp.lt.f32.partialorder %v142_v2, 0.0004427343 }
  0xa4   :  { %v165_v61 = vsel %vm161_vm2, %v96_v19, %v157_v57  ;;  %v141_v8 = vmul.f32 %v379_v47, %v140_v63  ;;  %v126_v14 = vsel %vm125_vm5, %v123_v10, %v120_v5  ;;  %v155_v18 = vadd.f32 %v135_v9, %v99_v12 }
  0xa5   :  { %219 = vmatpush.msra.mxu1 %v165_v61  ;;  %361 = vmatpush.msra.mxu3 %v165_v61  ;;  %v98_v19 = vmax.f32 %v507_v15, 0.0 }
  0xa6   :  { %v163_v22 = vsel %vm159_vm7, %v510_v23, %v155_v18  ;;  %v167_v23 = vld [vmem:[%s578_s3 + $0x8] sm:$0xff] }
  0xa7   :  { %v154_v21 = vadd.f32 %v126_v14, %v98_v19 }
  0xa8   :  { %v385_v6 = vpop.eup %384 }
  0xa9   :  { %v138_v7 = vmul.f32 0.6931472, %v385_v6  ;;  %v162_v26 = vsel %vm158_vm8, %v507_v15, %v154_v21  ;;  %v177_v15 = vpop.permute.xlu1 %176 }
  0xab   :  { %v144_v13 = vsel %vm143_vm4, %v141_v8, %v138_v7 }
  0xac   :  { %v156_v17 = vadd.f32 %v144_v13, %v100_v11 }
  0xae   :  { %v164_v20 = vsel %vm160_vm6, %v513_v32, %v156_v17  ;;  %v187_v32 = vpop.permute.xlu2 %186 }
  0xaf   :  { %220 = vmatpush.msra.mxu1 %v164_v20  ;;  %362 = vmatpush.msra.mxu3 %v164_v20 }
  0xb1   :  { %221 = vmatpush.msra.mxu1 %v163_v22  ;;  %363 = vmatpush.msra.mxu3 %v163_v22 }
  0xb3   :  { %222 = vmatpush.msra.mxu1 %v162_v26  ;;  %364 = vmatpush.msra.mxu3 %v162_v26 }
  0xb4   :  { %355 = vmatmul.msk.f32.vlgmr.msra.gmra.mxu1 %vm194_vm9, %v166_v24  ;;  %357 = vmatmul.msk.f32.vlgmr.msra.gmra.mxu3 %vm194_vm9, %v168_v25 }
  0xbc   :  { %356 = vmatmul.msk.f32.gmra.mxu1 %vm194_vm9, %v167_v23  ;;  %358 = vmatmul.msk.f32.gmra.mxu3 %vm194_vm9, %v169_v27 }
 0x131   :  { %v224_v29 = vpop.f32.mrf.mxu1 }
 0x132   :  { %v550_v30 = vadd.f32 %v224_v29, %v177_v15 }
 0x134   :  { %v240_v31 = vand.u32 2147483647, %v550_v30  ;;  %vm296_vm1 = vcmp.gt.f32.partialorder %v550_v30, 20.0 }
 0x136   :  { %v244_v36 = vsub.f32 0.0, %v240_v31  ;;  %v236_v31 = vmax.f32 %v550_v30, 0.0 }
 0x137   :  { %v230_v33 = vpop.f32.mrf.mxu3 }
 0x138   :  { %v553_v34 = vadd.f32 %v230_v33, %v187_v32  ;;  %v248_v42 = vmul.f32 1.442695, %v244_v36  ;;  %v304_v36 = vld [vmem:[%s580_s5] sm:$0xf] }
 0x139   :  { %v227_v37 = vpop.f32.mrf.mxu1 }
 0x13a   :  { %v242_v38 = vand.u32 2147483647, %v553_v34  ;;  %v556_v39 = vadd.f32 %v227_v37, %v182_v35  ;;  %v238_v21 = vmax.f32 %v553_v34, 0.0  ;;  %vm298_vm15 = vcmp.gt.f32.partialorder %v553_v34, 20.0 }
 0x13c   :  { %v246_v40 = vsub.f32 0.0, %v242_v38  ;;  %v241_v41 = vand.u32 2147483647, %v556_v39  ;;  %v237_v27 = vmax.f32 %v556_v39, 0.0  ;;  %vm297_vm0 = vcmp.gt.f32.partialorder %v556_v39, 20.0 }
 0x13e   :  { %v252_v43 = vmul.f32 1.442695, %v246_v40  ;;  %v245_v44 = vsub.f32 0.0, %v241_v41 }
 0x13f   :  { %v233_v45 = vpop.f32.mrf.mxu3 }
 0x140   :  { %386 = vpow2.f32 %v252_v43  ;;  %v250_v46 = vmul.f32 1.442695, %v245_v44  ;;  %v234_v47 = vadd.f32 %v233_v45, %v192_v28 }
 0x141   :  { %388 = vpow2.f32 %v248_v42 }
 0x142   :  { %390 = vpow2.f32 %v250_v46  ;;  %v243_v48 = vand.u32 2147483647, %v234_v47  ;;  %v239_v20 = vmax.f32 %v234_v47, 0.0  ;;  %vm299_vm14 = vcmp.gt.f32.partialorder %v234_v47, 20.0 }
 0x144   :  { %v247_v49 = vsub.f32 0.0, %v243_v48 }
 0x146   :  { %v387_v50 = vpop.eup %386  ;;  %v254_v51 = vmul.f32 1.442695, %v247_v49 }
 0x147   :  { %v389_v52 = vpop.eup %388  ;;  %v274_v53 = vadd.f32 1.0, %v387_v50  ;;  %v277_v58 = vmul.f32 -0.5, %v387_v50  ;;  %v280_v2 = vand.u32 2147483647, %v387_v50 }
 0x148   :  { %v391_v54 = vpop.eup %390  ;;  %392 = vpow2.f32 %v254_v51  ;;  %v256_v56 = vadd.f32 1.0, %v389_v52  ;;  %v259_v0 = vmul.f32 -0.5, %v389_v52  ;;  %v262_v14 = vand.u32 2147483647, %v389_v52 }
 0x149   :  { %v265_v55 = vadd.f32 1.0, %v391_v54  ;;  %394 = vlog2.f32 %v274_v53  ;;  %v268_v61 = vmul.f32 -0.5, %v391_v54  ;;  %v278_v63 = vadd.f32 1.0, %v277_v58 }
 0x14a   :  { %v271_v8 = vand.u32 2147483647, %v391_v54  ;;  %v260_v11 = vadd.f32 1.0, %v259_v0  ;;  %vm281_vm10 = vcmp.lt.f32.partialorder %v280_v2, 0.0004427343 }
 0x14b   :  { %396 = vlog2.f32 %v265_v55  ;;  %v269_v6 = vadd.f32 1.0, %v268_v61  ;;  %v279_v9 = vmul.f32 %v387_v50, %v278_v63  ;;  %vm263_vm13 = vcmp.lt.f32.partialorder %v262_v14, 0.0004427343 }
 0x14c   :  { %398 = vlog2.f32 %v256_v56  ;;  %vm272_vm12 = vcmp.lt.f32.partialorder %v271_v8, 0.0004427343  ;;  %v261_v25 = vmul.f32 %v389_v52, %v260_v11 }
 0x14d   :  { %v270_v19 = vmul.f32 %v391_v54, %v269_v6 }
 0x14e   :  { %v393_v57 = vpop.eup %392 }
 0x14f   :  { %v283_v59 = vadd.f32 1.0, %v393_v57  ;;  %v286_v60 = vmul.f32 -0.5, %v393_v57  ;;  %v395_v62 = vpop.eup %394  ;;  %v289_v7 = vand.u32 2147483647, %v393_v57 }
 0x150   :  { %v276_v5 = vmul.f32 0.6931472, %v395_v62 }
 0x151   :  { %400 = vlog2.f32 %v283_v59  ;;  %v397_v1 = vpop.eup %396  ;;  %v287_v4 = vadd.f32 1.0, %v286_v60  ;;  %vm290_vm11 = vcmp.lt.f32.partialorder %v289_v7, 0.0004427343 }
 0x152   :  { %v399_v3 = vpop.eup %398  ;;  %v267_v10 = vmul.f32 0.6931472, %v397_v1  ;;  %v282_v18 = vsel %vm281_vm10, %v279_v9, %v276_v5 }
 0x153   :  { %v258_v13 = vmul.f32 0.6931472, %v399_v3  ;;  %v288_v17 = vmul.f32 %v393_v57, %v287_v4  ;;  %v294_v23 = vadd.f32 %v282_v18, %v238_v21 }
 0x154   :  { %v273_v24 = vsel %vm272_vm12, %v270_v19, %v267_v10 }
 0x155   :  { %v264_v28 = vsel %vm263_vm13, %v261_v25, %v258_v13  ;;  %v293_v29 = vadd.f32 %v273_v24, %v237_v27  ;;  %v302_v32 = vsel %vm298_vm15, %v553_v34, %v294_v23  ;;  %v309_v34 = vpop.permute.xlu2 %308 }
 0x156   :  { %v292_v33 = vadd.f32 %v264_v28, %v236_v31 }
 0x157   :  { %v401_v12 = vpop.eup %400  ;;  %v301_v35 = vsel %vm297_vm0, %v556_v39, %v293_v29 }
 0x158   :  { %v285_v16 = vmul.f32 0.6931472, %v401_v12  ;;  %v300_v37 = vsel %vm296_vm1, %v550_v30, %v292_v33 }
 0x15a   :  { %v291_v22 = vsel %vm290_vm11, %v288_v17, %v285_v16 }
 0x15b   :  { %v295_v26 = vadd.f32 %v291_v22, %v239_v20 }
 0x15d   :  { %v303_v15 = vsel %vm299_vm14, %v234_v47, %v295_v26 }
 0x15e   :  { %326 = vmatpush.msrb.mxu2 %v303_v15 }
 0x160   :  { %327 = vmatpush.msrb.mxu2 %v302_v32 }
 0x162   :  { %328 = vmatpush.msrb.mxu2 %v301_v35 }
 0x164   :  { %329 = vmatpush.msrb.mxu2 %v300_v37 }
 0x165   :  { %359 = vmatmul.msk.f32.vlgmr.msrb.gmra.mxu2 %vm194_vm9, %v304_v36 }
 0x1e8   :  { %v331_v38 = vpop.f32.mrf.mxu2 }
 0x1e9   :  { %v332_v39 = vadd.f32 %v331_v38, %v309_v34 }
 0x1eb   :  { %334 = vst [vmem:[#allocation2] sm:$0xf] %v332_v39 }
 0x1ec   :  { %345 = dma.vmem_to_hbm [thread:$0]  %s341_s0, 64, %s343_s13, [#allocation3]  }
 0x1ed   :  { %426 = dma.done.wait [#allocation3], 64  }
 0x1ee   :  { %427 = vsyncadd [#allocation3], 4294967232 }
 0x1ef   :  { %350 = vsyncpa [#allocation3], 1 }

</bundles_post_ra>
